<compile_context>
chip_gen: v6e
topology: v6e:2x2x1
jax: 0.10.0
libtpu: 0.0.40
codegen_flags: <defaults>
</compile_context>

<pallas_src>
import functools

import jax
import jax.numpy as jnp
from jax import lax
from jax.experimental import pallas as pl
from jax.experimental.pallas import tpu as pltpu

LANE = 128          # lane-dense last dim of the flattened slab
MAX_TILE_R = 4096   # (4096, 128) f32 block = 2 MiB per operand per buffer
CHUNK_R = 256       # rows per in-kernel chunk (bounds vreg live ranges)


def _round_up(x, m):
    return (x + m - 1) // m * m


def _row_packing(*dtypes):
    """Row (sublane) multiple required so every operand keeps its native tiling."""
    pack = 8
    for dt in dtypes:
        bits = jnp.dtype(dt).itemsize * 8
        pack = max(pack, 8 * max(1, 32 // bits))   # f32->8, bf16->16, int8/fp8->32
    return pack


def _vmem_limit(block_bytes):
    # 2x for double buffering + headroom; stays well under v7x's 64 MiB physical.
    return min(int(2.5 * block_bytes) + (4 << 20), 48 << 20)


@functools.lru_cache(maxsize=1)
def _reduce_in_parallel():
    """True -> per-block partials + 'parallel' grid (multi-TensorCore chips).
    False -> resident (8,128) accumulator + 'arbitrary' grid (single-TC chips)."""
    try:
        kind = jax.devices()[0].device_kind.lower()
    except Exception:
        return True
    single_tc = ("v5e", "v5 lite", "v5lite", "v6e", "v6 lite", "v6lite")
    return not any(s in kind for s in single_tc)


# ---------------------------------------------------------------------------
# Kernel builders (trace-time specialization: weight / mask / accumulate mode)
# ---------------------------------------------------------------------------
def _make_reduce_kernel(has_weight, need_mask, rows, tile_r, chunk, accumulate):
    """Sum of weight*(pred-target)^2 over the block, chunked to avoid spills.

    accumulate=False: each grid step writes its own (8,128) partial (parallel grid).
    accumulate=True : one resident (8,128) accumulator across the grid (arbitrary).
    """
    n_in = 3 if has_weight else 2
    num_blocks = -(-rows // tile_r)
    last_rows = rows - (num_blocks - 1) * tile_r   # valid rows in the final block

    def block_partial(in_refs, masked):
        if has_weight:
            p_ref, t_ref, w_ref = in_refs
        else:
            (p_ref, t_ref), w_ref = in_refs, None
        acc = jnp.zeros((8, LANE), jnp.float32)
        j0 = 0
        while j0 < tile_r:                      # static Python loop -> fully unrolled
            nrows = min(chunk, tile_r - j0)
            if masked and j0 >= last_rows:
                break                           # fully OOB chunks contribute nothing
            sl = pl.ds(j0, nrows)
            d = p_ref[sl, :].astype(jnp.float32) - t_ref[sl, :].astype(jnp.float32)
            sq = d * d
            if w_ref is not None:
                sq = sq * w_ref[sl, :].astype(jnp.float32)
            if masked and j0 + nrows > last_rows:
                # Only the straddling chunk of the final block pays for the mask.
                row = lax.broadcasted_iota(jnp.int32, sq.shape, 0)
                sq = jnp.where(row < (last_rows - j0), sq, 0.0)
            # Pure VPU adds: (nrows//8, 8, 128) is layout-identical to (nrows, 128).
            acc = acc + jnp.sum(sq.reshape(nrows // 8, 8, LANE), axis=0)
            j0 += nrows
        return acc

    def kernel(*refs):
        in_refs, o_ref = refs[:n_in], refs[n_in]

        if accumulate:
            @pl.when(pl.program_id(0) == 0)
            def _():
                o_ref[...] = jnp.zeros_like(o_ref)

        def emit(val):
            if accumulate:
                o_ref[...] += val
            else:
                o_ref[...] = val

        if need_mask:
            is_last = pl.program_id(0) == pl.num_programs(0) - 1

            @pl.when(is_last)
            def _():
                emit(block_partial(in_refs, True))

            @pl.when(jnp.logical_not(is_last))
            def _():
                emit(block_partial(in_refs, False))
        else:
            emit(block_partial(in_refs, False))

    return kernel


def _make_elementwise_kernel(has_weight, loss_weight, tile_r, chunk):
    """weight * (pred - target)^2 [* loss_weight], elementwise, chunked."""
    n_in = 3 if has_weight else 2

    def kernel(*refs):
        in_refs, o_ref = refs[:n_in], refs[n_in]
        if has_weight:
            p_ref, t_ref, w_ref = in_refs
        else:
            (p_ref, t_ref), w_ref = in_refs, None
        j0 = 0
        while j0 < tile_r:
            nrows = min(chunk, tile_r - j0)
            sl = pl.ds(j0, nrows)
            d = p_ref[sl, :].astype(jnp.float32) - t_ref[sl, :].astype(jnp.float32)
            sq = d * d
            if w_ref is not None:
                sq = sq * w_ref[sl, :].astype(jnp.float32)
            if loss_weight != 1.0:
                sq = sq * jnp.float32(loss_weight)
            o_ref[sl, :] = sq.astype(o_ref.dtype)
            j0 += nrows

    return kernel


# ---------------------------------------------------------------------------
# Pallas call wrappers
# ---------------------------------------------------------------------------
def _pallas_sum_sq(operands, has_weight, parallel_reduce):
    rows = operands[0].shape[0]
    packing = _row_packing(*(o.dtype for o in operands))
    tile_r = min(MAX_TILE_R, _round_up(rows, packing))
    num_blocks = -(-rows // tile_r)
    need_mask = (rows % tile_r) != 0

    in_specs = [pl.BlockSpec((tile_r, LANE), lambda i: (i, 0)) for _ in operands]
    kernel = _make_reduce_kernel(has_weight, need_mask, rows, tile_r, CHUNK_R,
                                 accumulate=not parallel_reduce)

    in_bytes = sum(int(o.size) * o.dtype.itemsize for o in operands)
    block_bytes = sum(tile_r * LANE * o.dtype.itemsize for o in operands) + 8 * LANE * 4

    if parallel_reduce:
        out_shape = jax.ShapeDtypeStruct((num_blocks * 8, LANE), jnp.float32)
        out_specs = pl.BlockSpec((8, LANE), lambda i: (i, 0))
        semantics = ("parallel",)
        out_bytes = num_blocks * 8 * LANE * 4
    else:
        out_shape = jax.ShapeDtypeStruct((8, LANE), jnp.float32)
        out_specs = pl.BlockSpec((8, LANE), lambda i: (0, 0))
        semantics = ("arbitrary",)
        out_bytes = 8 * LANE * 4

    partials = pl.pallas_call(
        kernel,
        out_shape=out_shape,
        grid_spec=pltpu.PrefetchScalarGridSpec(
            num_scalar_prefetch=0,
            grid=(num_blocks,),
            in_specs=in_specs,
            out_specs=out_specs,
        ),
        compiler_params=pltpu.CompilerParams(
            dimension_semantics=semantics,
            vmem_limit_bytes=_vmem_limit(block_bytes)),
        cost_estimate=pl.CostEstimate(
            flops=4 * rows * LANE, transcendentals=0,
            bytes_accessed=in_bytes + out_bytes),
    )(*operands)
    return jnp.sum(partials)


def _pallas_elementwise(operands, has_weight, loss_weight, out_dtype):
    rows = operands[0].shape[0]
    packing = _row_packing(*(o.dtype for o in operands), out_dtype)
    tile_r = min(MAX_TILE_R, _round_up(rows, packing))
    num_blocks = -(-rows // tile_r)

    in_specs = [pl.BlockSpec((tile_r, LANE), lambda i: (i, 0)) for _ in operands]
    in_bytes = sum(int(o.size) * o.dtype.itemsize for o in operands)
    out_item = jnp.dtype(out_dtype).itemsize
    block_bytes = (sum(tile_r * LANE * o.dtype.itemsize for o in operands)
                   + tile_r * LANE * out_item)

    return pl.pallas_call(
        _make_elementwise_kernel(has_weight, loss_weight, tile_r, CHUNK_R),
        out_shape=jax.ShapeDtypeStruct((rows, LANE), out_dtype),
        grid_spec=pltpu.PrefetchScalarGridSpec(
            num_scalar_prefetch=0,
            grid=(num_blocks,),
            in_specs=in_specs,
            out_specs=pl.BlockSpec((tile_r, LANE), lambda i: (i, 0)),
        ),
        compiler_params=pltpu.CompilerParams(
            dimension_semantics=("parallel",),
            vmem_limit_bytes=_vmem_limit(block_bytes)),
        cost_estimate=pl.CostEstimate(
            flops=4 * rows * LANE, transcendentals=0,
            bytes_accessed=in_bytes + rows * LANE * out_item),
    )(*operands)


# ---------------------------------------------------------------------------
# Top-level implementation
# ---------------------------------------------------------------------------
@functools.partial(jax.jit, static_argnames=("reduction", "has_weight",
                                             "has_avg_factor", "loss_weight",
                                             "parallel_reduce"))
def _mse_loss_impl(pred, target, weight, avg_factor, *, reduction,
                   has_weight, has_avg_factor, loss_weight, parallel_reduce):
    orig_shape = pred.shape
    orig_dtype = pred.dtype
    numel = pred.size

    flats = [jnp.reshape(pred, (-1,)), jnp.reshape(target, (-1,))]
    if has_weight:
        flats.append(jnp.reshape(weight, (-1,)))

    bulk_rows = numel // LANE
    bulk_elems = bulk_rows * LANE
    has_tail = bulk_elems != numel

    bulk_ops = None
    if bulk_rows > 0:
        if has_tail:
            # TODO(synk): the prefix slice may still materialize a copy for ragged
            # numel; it is strictly cheaper than padding every operand.
            bulk_ops = [jnp.reshape(f[:bulk_elems], (bulk_rows, LANE)) for f in flats]
        else:
            bulk_ops = [jnp.reshape(f, (bulk_rows, LANE)) for f in flats]
    tail_ops = [f[bulk_elems:] for f in flats] if has_tail else None

    def tail_sq():
        d = tail_ops[0].astype(jnp.float32) - tail_ops[1].astype(jnp.float32)
        sq = d * d
        if has_weight:
            sq = sq * tail_ops[2].astype(jnp.float32)
        return sq

    if reduction == "none":
        pieces = []
        if bulk_ops is not None:
            out2 = _pallas_elementwise(bulk_ops, has_weight, loss_weight, orig_dtype)
            pieces.append(jnp.reshape(out2, (-1,)))
        if has_tail:
            t = tail_sq()
            if loss_weight != 1.0:
                t = t * jnp.float32(loss_weight)
            pieces.append(t.astype(orig_dtype))
        flat = pieces[0] if len(pieces) == 1 else jnp.concatenate(pieces)
        return jnp.reshape(flat, orig_shape)

    # 'mean' / 'sum'
    total = jnp.float32(0.0)
    if bulk_ops is not None:
        total = total + _pallas_sum_sq(bulk_ops, has_weight, parallel_reduce)
    if has_tail:
        total = total + jnp.sum(tail_sq())

    if reduction == "mean":
        if has_avg_factor:
            total = total / avg_factor
        else:
            total = total / jnp.float32(numel)
    return (jnp.float32(loss_weight) * total).astype(orig_dtype)


class MSELossPallas:
    """JAX/Pallas equivalent of the PyTorch MSELoss module."""

    def __init__(self, reduction="mean", loss_weight=1.0):
        assert reduction in ("none", "mean", "sum")
        self.reduction = reduction
        self.loss_weight = float(loss_weight)

    def __call__(self, pred, target, weight=None, avg_factor=None,
                 reduction_override=None):
        assert reduction_override in (None, "none", "mean", "sum")
        reduction = reduction_override if reduction_override else self.reduction
        if avg_factor is not None and reduction != "mean":
            # Matches mmdet weight_reduce_loss: avg_factor only valid with 'mean'.
            raise ValueError("avg_factor can only be used with reduction='mean'")
        if weight is not None:
            assert weight.shape == pred.shape
        avg = jnp.float32(avg_factor if avg_factor is not None else 1.0)
        return _mse_loss_impl(
            pred, target,
            weight if weight is not None else pred,  # placeholder, ignored
            avg,
            reduction=reduction,
            has_weight=weight is not None,
            has_avg_factor=avg_factor is not None,
            loss_weight=self.loss_weight,
            parallel_reduce=_reduce_in_parallel(),
        )


# ---------------------------------------------------------------------------
# Demo / self-check
# ---------------------------------------------------------------------------
if __name__ == "__main__":
    key = jax.random.PRNGKey(0)
    k1, k2, k3 = jax.random.split(key, 3)

    # layout: NCHW, same as PyTorch (elementwise op -> layout-agnostic).
    shape = (2, 4, 16, 16)
    pred = jax.random.normal(k1, shape, dtype=jnp.float32)
    target = jax.random.normal(k2, shape, dtype=jnp.float32)
    weight = jax.random.uniform(k3, shape, dtype=jnp.float32)

    loss_mod = MSELossPallas(reduction="mean", loss_weight=1.0)

    out_mean = loss_mod(pred, target)
    out_avg = loss_mod(pred, target, weight=weight, avg_factor=100.0)
    out_sum = loss_mod(pred, target, reduction_override="sum")
    out_none = loss_mod(pred, target, weight=weight, reduction_override="none")
    jax.block_until_ready((out_mean, out_avg, out_sum, out_none))

    ref_elem = (pred - target) ** 2
    assert jnp.allclose(out_mean, ref_elem.mean(), rtol=1e-5, atol=1e-5)
    assert jnp.allclose(out_sum, ref_elem.sum(), rtol=1e-5, atol=1e-5)
    assert jnp.allclose(out_avg, (ref_elem * weight).sum() / 100.0, rtol=1e-5, atol=1e-5)
    assert out_none.shape == shape
    assert jnp.allclose(out_none, ref_elem * weight, rtol=1e-5, atol=1e-5)

    # Ragged numel (numel % 128 != 0) exercises bulk+tail and the masked block.
    rshape = (5, 333)
    rp = jax.random.normal(k1, rshape, dtype=jnp.float32)
    rt = jax.random.normal(k2, rshape, dtype=jnp.float32)
    rw = jax.random.uniform(k3, rshape, dtype=jnp.float32)
    r_ref = (rp - rt) ** 2
    r_mean = loss_mod(rp, rt, weight=rw)
    r_sum = loss_mod(rp, rt, reduction_override="sum")
    r_none = loss_mod(rp, rt, weight=rw, reduction_override="none")
    jax.block_until_ready((r_mean, r_sum, r_none))
    assert jnp.allclose(r_mean, (r_ref * rw).mean(), rtol=1e-5, atol=1e-5)
    assert jnp.allclose(r_sum, r_ref.sum(), rtol=1e-5, atol=1e-5)
    assert jnp.allclose(r_none, r_ref * rw, rtol=1e-5, atol=1e-5)

    # Multi-block reduction with a ragged (masked) final block.
    bshape = (2, 3, 512, 200)
    bp = jax.random.normal(k1, bshape, dtype=jnp.float32)
    bt = jax.random.normal(k2, bshape, dtype=jnp.float32)
    b_ref = (bp - bt) ** 2
    b_sum = loss_mod(bp, bt, reduction_override="sum")
    b_mean = loss_mod(bp, bt)
    jax.block_until_ready((b_sum, b_mean))
    assert jnp.allclose(b_sum, b_ref.sum(), rtol=1e-4, atol=1e-3)
    assert jnp.allclose(b_mean, b_ref.mean(), rtol=1e-4, atol=1e-6)

    # bf16 inputs: native-dtype streaming, f32 accumulation, bf16 result dtype.
    hp = pred.astype(jnp.bfloat16)
    ht = target.astype(jnp.bfloat16)
    h_mean = loss_mod(hp, ht)
    jax.block_until_ready(h_mean)
    h_ref = jnp.mean((hp.astype(jnp.float32) - ht.astype(jnp.float32)) ** 2)
    assert h_mean.dtype == jnp.bfloat16
    assert jnp.allclose(h_mean.astype(jnp.float32), h_ref, rtol=2e-2, atol=2e-2)

    print("KERNEL_OK")
</pallas_src>

<mosaic_0001>
module attributes {stable_mosaic.version = 11 : i64} {
  func.func @kernel(%arg0: i32, %arg1: memref<16x128xf32, #tpu.memory_space<vmem>>, %arg2: memref<16x128xf32, #tpu.memory_space<vmem>>, %arg3: memref<8x128xf32, #tpu.memory_space<vmem>>) attributes {dimension_semantics = [#tpu.dimension_semantics<parallel>], iteration_bounds = array<i64: 1>, scalar_prefetch = 0 : i64, scratch_operands = 0 : i64, tpu.core_type = #tpu.core_type<tc>, window_params = [{transform_indices = @transform_0, window_bounds = array<i64: 16, 128>}, {transform_indices = @transform_1, window_bounds = array<i64: 16, 128>}, {transform_indices = @transform_2, window_bounds = array<i64: 8, 128>}]} {
    %cst = arith.constant 0.000000e+00 : f32
    %0 = vector.broadcast %cst : f32 to vector<8x128xf32>
    %c0 = arith.constant 0 : index
    %c0_0 = arith.constant 0 : index
    %1 = vector.load %arg1[%c0, %c0_0] : memref<16x128xf32, #tpu.memory_space<vmem>>, vector<16x128xf32>
    %c0_1 = arith.constant 0 : index
    %c0_2 = arith.constant 0 : index
    %2 = vector.load %arg2[%c0_1, %c0_2] : memref<16x128xf32, #tpu.memory_space<vmem>>, vector<16x128xf32>
    %3 = arith.subf %1, %2 : vector<16x128xf32>
    %4 = arith.mulf %3, %3 : vector<16x128xf32>
    %5 = vector.shape_cast %4 : vector<16x128xf32> to vector<2x8x128xf32>
    %cst_3 = arith.constant dense<0.000000e+00> : vector<8x128xf32>
    %6 = vector.multi_reduction <add>, %5, %cst_3 [0] : vector<2x8x128xf32> to vector<8x128xf32>
    %7 = arith.addf %0, %6 : vector<8x128xf32>
    %c0_4 = arith.constant 0 : index
    %c0_5 = arith.constant 0 : index
    %8 = vector.load %arg3[%c0_4, %c0_5] : memref<8x128xf32, #tpu.memory_space<vmem>>, vector<8x128xf32>
    tpu.vector_store %arg3[%c0_4, %c0_5], %7 {strides = array<i32>} : memref<8x128xf32, #tpu.memory_space<vmem>>, vector<8x128xf32>,
    return
  }
  func.func @transform_0(%arg0: i32) -> (i32, i32) {
    %c0_i32 = arith.constant 0 : i32
    %c0_i32_0 = arith.constant 0 : i32
    return %arg0, %c0_i32 : i32, i32
  }
  func.func @transform_1(%arg0: i32) -> (i32, i32) {
    %c0_i32 = arith.constant 0 : i32
    %c0_i32_0 = arith.constant 0 : i32
    return %arg0, %c0_i32 : i32, i32
  }
  func.func @transform_2(%arg0: i32) -> (i32, i32) {
    %c0_i32 = arith.constant 0 : i32
    %c0_i32_0 = arith.constant 0 : i32
    return %arg0, %c0_i32 : i32, i32
  }
}

</mosaic_0001>

<bundles_post_ra>
// kernel: _mse_loss_impl.1
= control target key start
LH: loop header
LB: loop body
LE: loop exit
PB: predicated region body
PF: predicated region fallthrough
CT: control target
= control target key end

     0   :  { %s56_s0 = inlined_call_operand.vmem [shape: f32[16,128], index: 0, kind: input, shape index: {}]   ;;  %s57_s1 = inlined_call_operand.vmem [shape: f32[16,128], index: 1, kind: input, shape index: {}]   ;;  %s58_s2 = inlined_call_operand.vmem [shape: f32[8,128], index: 2, kind: output, shape index: {}]  }
   0x1   :  { %v11_v0 = vld [vmem:[%s56_s0] sm:$0xff]  ;;  %v12_v1 = vld [vmem:[%s56_s0 + $0x8] sm:$0xff] }
   0x2   :  { %v13_v2 = vld [vmem:[%s57_s1] sm:$0xff]  ;;  %v14_v3 = vld [vmem:[%s57_s1 + $0x8] sm:$0xff] }
   0x3   :  { %v15_v4 = vsub.f32 %v11_v0, %v13_v2  ;;  %v16_v5 = vsub.f32 %v12_v1, %v14_v3 }
   0x5   :  { %v17_v6 = vmul.f32 %v15_v4, %v15_v4  ;;  %v18_v7 = vmul.f32 %v16_v5, %v16_v5 }
   0x7   :  { %v19_v8 = vadd.f32 %v18_v7, %v17_v6 }
   0x9   :  { %21 = vst [vmem:[%s58_s2] sm:$0xff] %v19_v8 }

</bundles_post_ra>
